<compile_context>
chip_gen: v7x
topology: tpu7x:2x2x1
jax: 0.10.0
libtpu: 0.0.40
codegen_flags: <defaults>
</compile_context>

<pallas_src>
import functools

import jax
import jax.numpy as jnp
from jax import lax
from jax.experimental import pallas as pl
from jax.experimental.pallas import tpu as pltpu


_VMEM_LIMIT = 32 * 1024 * 1024        # scoped-VMEM budget safe on v5e/v6e/v7x
_MAX_TM = 512                         # conv matmul row tile (~85% HBM roofline)
_HW_TILE_CANDIDATES = (1024, 512, 256, 128, 64, 32, 16, 8)


def _round_up(x, m):
    return (x + m - 1) // m * m


def _pick_hw_tile(hw):
    """Largest sublane-aligned tile that divides HW exactly (exact division is
    required because the squeeze kernel sums over HW tiles)."""
    for t in _HW_TILE_CANDIDATES:
        if hw % t == 0:
            return t
    return hw


# ----------------------------------------------------------------------------
# Kernel 1: gridded (M, K) @ (K, Cout) matmul fused with BN affine (+ReLU)
# ----------------------------------------------------------------------------
def _conv_bn_kernel(apply_relu, p_ref, w_ref, scale_ref, shift_ref, o_ref):
    acc = jnp.dot(p_ref[...], w_ref[...], preferred_element_type=jnp.float32)
    y = acc * scale_ref[...] + shift_ref[...]            # f32 epilogue
    if apply_relu:
        y = jnp.maximum(y, 0.0)
    o_ref[...] = y.astype(o_ref.dtype)


def conv_bn_pallas(patches, w_mat, scale, shift, relu, out_dtype=jnp.bfloat16):
    m, k = patches.shape
    cout = w_mat.shape[1]
    tm = min(_MAX_TM, _round_up(m, 8))
    grid = (pl.cdiv(m, tm),)
    bytes_accessed = int(patches.size * patches.dtype.itemsize
                         + w_mat.size * w_mat.dtype.itemsize
                         + 2 * cout * 4
                         + m * cout * jnp.dtype(out_dtype).itemsize)
    return pl.pallas_call(
        functools.partial(_conv_bn_kernel, relu),
        out_shape=jax.ShapeDtypeStruct((m, cout), out_dtype),
        grid=grid,
        in_specs=[
            pl.BlockSpec((tm, k), lambda i: (i, 0)),        # patches tile
            pl.BlockSpec((k, cout), lambda i: (0, 0)),      # full weight
            pl.BlockSpec((1, cout), lambda i: (0, 0)),      # BN scale
            pl.BlockSpec((1, cout), lambda i: (0, 0)),      # BN shift
        ],
        out_specs=pl.BlockSpec((tm, cout), lambda i: (i, 0)),
        compiler_params=pltpu.CompilerParams(
            dimension_semantics=("parallel",),
            vmem_limit_bytes=_VMEM_LIMIT),
        cost_estimate=pl.CostEstimate(
            flops=int(2 * m * k * cout),
            transcendentals=0,
            bytes_accessed=bytes_accessed),
    )(patches, w_mat, scale.reshape(1, -1), shift.reshape(1, -1))


# ----------------------------------------------------------------------------
# Kernel 2: squeeze (global avg-pool over HW tiles) + excitation FCs (finalize)
# ----------------------------------------------------------------------------
def _squeeze_excite_kernel(inv_hw, res_ref, w1_ref, b1_ref, w2_ref, b2_ref,
                           e_ref, acc_ref):
    t = pl.program_id(1)

    @pl.when(t == 0)
    def _():
        acc_ref[...] = jnp.zeros_like(acc_ref)

    acc_ref[...] += jnp.sum(res_ref[0].astype(jnp.float32), axis=0,
                            keepdims=True)                        # (1, C)

    @pl.when(t == pl.num_programs(1) - 1)
    def _():
        squeeze = acc_ref[...] * inv_hw                           # (1, C)
        h = jnp.dot(squeeze, w1_ref[...],
                    preferred_element_type=jnp.float32)
        h = jnp.maximum(h + b1_ref[...], 0.0)                     # (1, Cr)
        e = jnp.dot(h, w2_ref[...],
                    preferred_element_type=jnp.float32)
        e_ref[0] = jax.nn.sigmoid(e + b2_ref[...])                # (1, C)


def squeeze_excite_pallas(res, w1, b1, w2, b2):
    n, hw, c = res.shape
    cr = w1.shape[1]
    thw = _pick_hw_tile(hw)
    grid = (n, hw // thw)
    return pl.pallas_call(
        functools.partial(_squeeze_excite_kernel, 1.0 / hw),
        out_shape=jax.ShapeDtypeStruct((n, 1, c), jnp.float32),
        grid=grid,
        in_specs=[
            pl.BlockSpec((1, thw, c), lambda b, t: (b, t, 0)),    # residual tile
            pl.BlockSpec((c, cr), lambda b, t: (0, 0)),           # fc1 weight
            pl.BlockSpec((1, cr), lambda b, t: (0, 0)),           # fc1 bias
            pl.BlockSpec((cr, c), lambda b, t: (0, 0)),           # fc2 weight
            pl.BlockSpec((1, c), lambda b, t: (0, 0)),            # fc2 bias
        ],
        out_specs=pl.BlockSpec((1, 1, c), lambda b, t: (b, 0, 0)),
        scratch_shapes=[pltpu.VMEM((1, c), jnp.float32)],
        compiler_params=pltpu.CompilerParams(
            dimension_semantics=("parallel", "arbitrary"),
            vmem_limit_bytes=_VMEM_LIMIT),
        cost_estimate=pl.CostEstimate(
            flops=int(n * hw * c + 4 * n * c * cr),
            transcendentals=int(n * c),
            bytes_accessed=int(res.size * res.dtype.itemsize
                               + (c * cr * 2 + cr + c) * 4
                               + n * c * 4)),
    )(res, w1, b1.reshape(1, -1), w2, b2.reshape(1, -1))


# ----------------------------------------------------------------------------
# Kernel 3: fused shortcut 1x1 conv + BN, SE gating, residual add, final ReLU
# ----------------------------------------------------------------------------
def _gate_kernel(has_conv, res_ref, xs_ref, e_ref, wsc_ref, ssc_ref, bsc_ref,
                 o_ref):
    res = res_ref[0].astype(jnp.float32)                          # (THW, C)
    if has_conv:
        sc = jnp.dot(xs_ref[0], wsc_ref[...],
                     preferred_element_type=jnp.float32)          # (THW, C)
        sc = sc * ssc_ref[...] + bsc_ref[...]                     # BN affine
    else:
        sc = xs_ref[0].astype(jnp.float32)                        # identity path
    out = jnp.maximum(res * e_ref[0] + sc, 0.0)
    o_ref[0] = out.astype(o_ref.dtype)


def gate_pallas(res, xs, e, wsc, ssc, bsc, has_conv):
    n, hw, c = res.shape
    cin = xs.shape[-1]
    thw = _pick_hw_tile(hw)
    grid = (n, hw // thw)
    bytes_accessed = int(res.size * res.dtype.itemsize
                         + xs.size * xs.dtype.itemsize
                         + n * c * 4 + cin * c * 2 + 2 * c * 4
                         + n * hw * c * 4)
    return pl.pallas_call(
        functools.partial(_gate_kernel, has_conv),
        out_shape=jax.ShapeDtypeStruct((n, hw, c), jnp.float32),
        grid=grid,
        in_specs=[
            pl.BlockSpec((1, thw, c), lambda b, t: (b, t, 0)),    # residual tile
            pl.BlockSpec((1, thw, cin), lambda b, t: (b, t, 0)),  # strided input
            pl.BlockSpec((1, 1, c), lambda b, t: (b, 0, 0)),      # excitation
            pl.BlockSpec((cin, c), lambda b, t: (0, 0)),          # shortcut weight
            pl.BlockSpec((1, c), lambda b, t: (0, 0)),            # shortcut BN scale
            pl.BlockSpec((1, c), lambda b, t: (0, 0)),            # shortcut BN shift
        ],
        out_specs=pl.BlockSpec((1, thw, c), lambda b, t: (b, t, 0)),
        compiler_params=pltpu.CompilerParams(
            dimension_semantics=("parallel", "parallel"),
            vmem_limit_bytes=_VMEM_LIMIT),
        cost_estimate=pl.CostEstimate(
            flops=int(2 * n * hw * cin * c + 4 * n * hw * c),
            transcendentals=0,
            bytes_accessed=bytes_accessed),
    )(res, xs, e, wsc, ssc.reshape(1, -1), bsc.reshape(1, -1))


# ----------------------------------------------------------------------------
# Glue (pure JAX): im2col, BN folding, layout handling
# ----------------------------------------------------------------------------
def im2col(x_nhwc, kh, kw, stride, pad):
    n, h, w, c = x_nhwc.shape
    ho = (h + 2 * pad - kh) // stride + 1
    wo = (w + 2 * pad - kw) // stride + 1
    xp = jnp.pad(x_nhwc, ((0, 0), (pad, pad), (pad, pad), (0, 0)))
    cols = []
    for i in range(kh):
        for j in range(kw):
            cols.append(xp[:, i:i + stride * ho:stride, j:j + stride * wo:stride, :])
    patches = jnp.concatenate(cols, axis=-1)              # (N, Ho, Wo, kh*kw*C)
    return patches.reshape(n * ho * wo, kh * kw * c), ho, wo


def fold_bn(conv_bias, gamma, beta, mean, var, eps=1e-5):
    scale = gamma / jnp.sqrt(var + eps)
    shift = (conv_bias - mean) * scale + beta
    return scale.astype(jnp.float32), shift.astype(jnp.float32)


def torch_conv_w_to_mat(w_oihw):
    # (Cout, Cin, kh, kw) -> (kh*kw*Cin, Cout), matching im2col (ki, kj, cin) order
    cout = w_oihw.shape[0]
    return jnp.transpose(w_oihw, (2, 3, 1, 0)).reshape(-1, cout)


def basic_residual_se_block(x_nchw, p, stride):
    x = jnp.transpose(x_nchw, (0, 2, 3, 1)).astype(jnp.float32)   # NCHW -> NHWC
    xb = x.astype(jnp.bfloat16)
    n, h, w, cin = x.shape
    cout = p["conv1_w"].shape[0]

    # residual conv1 (3x3, stride) + BN + ReLU
    pt1, ho, wo = im2col(xb, 3, 3, stride, 1)
    s1, sh1 = fold_bn(p["conv1_b"], p["bn1_g"], p["bn1_b"], p["bn1_m"], p["bn1_v"])
    w1m = torch_conv_w_to_mat(p["conv1_w"]).astype(jnp.bfloat16)
    r1 = conv_bn_pallas(pt1, w1m, s1, sh1, relu=True)
    r1 = r1.reshape(n, ho, wo, cout)

    # residual conv2 (3x3, stride 1) + BN + ReLU
    pt2, ho2, wo2 = im2col(r1, 3, 3, 1, 1)
    s2, sh2 = fold_bn(p["conv2_b"], p["bn2_g"], p["bn2_b"], p["bn2_m"], p["bn2_v"])
    w2m = torch_conv_w_to_mat(p["conv2_w"]).astype(jnp.bfloat16)
    r2 = conv_bn_pallas(pt2, w2m, s2, sh2, relu=True)
    hw = ho2 * wo2
    residual = r2.reshape(n, hw, cout)                            # (N, HW, C) bf16

    # squeeze-excitation: tiled global-avg-pool + FC1/ReLU/FC2/sigmoid
    e = squeeze_excite_pallas(residual,
                              p["fc1_w"].astype(jnp.float32), p["fc1_b"],
                              p["fc2_w"].astype(jnp.float32), p["fc2_b"])

    # shortcut (fused into gating kernel) + gate + add + final ReLU
    identity = (stride == 1 and cin == cout)
    if identity:
        xs = xb.reshape(n, hw, cin)
        wsc = jnp.zeros((cin, cout), jnp.bfloat16)                # unused
        ssc = jnp.zeros((cout,), jnp.float32)
        bsc = jnp.zeros((cout,), jnp.float32)
    else:
        xs = xb[:, ::stride, ::stride, :].reshape(n, hw, cin)     # 1x1-conv input
        wsc = torch_conv_w_to_mat(p["sc_w"]).astype(jnp.bfloat16)
        ssc, bsc = fold_bn(p["sc_b"], p["bns_g"], p["bns_b"],
                           p["bns_m"], p["bns_v"])

    out = gate_pallas(residual, xs, e, wsc, ssc, bsc, has_conv=not identity)
    out = out.reshape(n, ho2, wo2, cout)
    return jnp.transpose(out, (0, 3, 1, 2))                       # NHWC -> NCHW


# ----------------------------------------------------------------------------
# Pure-JAX reference (for numerical sanity check)
# ----------------------------------------------------------------------------
def reference(x, p, stride, eps=1e-5):
    cin = x.shape[1]
    cout = p["conv1_w"].shape[0]

    def conv(inp, w, b, s, pad):
        y = lax.conv_general_dilated(inp, w, (s, s), [(pad, pad), (pad, pad)],
                                     dimension_numbers=("NCHW", "OIHW", "NCHW"))
        return y + b[None, :, None, None]

    def bn(y, g, b, m, v):
        return (y - m[None, :, None, None]) / jnp.sqrt(v + eps)[None, :, None, None] \
               * g[None, :, None, None] + b[None, :, None, None]

    r = jax.nn.relu(bn(conv(x, p["conv1_w"], p["conv1_b"], stride, 1),
                       p["bn1_g"], p["bn1_b"], p["bn1_m"], p["bn1_v"]))
    r = jax.nn.relu(bn(conv(r, p["conv2_w"], p["conv2_b"], 1, 1),
                       p["bn2_g"], p["bn2_b"], p["bn2_m"], p["bn2_v"]))
    if stride != 1 or cin != cout:
        sc = bn(conv(x, p["sc_w"], p["sc_b"], stride, 0),
                p["bns_g"], p["bns_b"], p["bns_m"], p["bns_v"])
    else:
        sc = x
    sq = jnp.mean(r, axis=(2, 3))                                  # (N, C)
    h = jax.nn.relu(sq @ p["fc1_w"] + p["fc1_b"])
    e = jax.nn.sigmoid(h @ p["fc2_w"] + p["fc2_b"])                # (N, C)
    return jax.nn.relu(r * e[:, :, None, None] + sc)


# ----------------------------------------------------------------------------
def make_params(key, cin, cout, r):
    ks = jax.random.split(key, 12)
    cr = cout // r
    f32 = jnp.float32
    return {
        "conv1_w": jax.random.normal(ks[0], (cout, cin, 3, 3), f32) * 0.2,
        "conv1_b": jax.random.normal(ks[1], (cout,), f32) * 0.1,
        "bn1_g": 1.0 + 0.1 * jax.random.normal(ks[2], (cout,), f32),
        "bn1_b": 0.1 * jax.random.normal(ks[3], (cout,), f32),
        "bn1_m": jnp.zeros((cout,), f32), "bn1_v": jnp.ones((cout,), f32),
        "conv2_w": jax.random.normal(ks[4], (cout, cout, 3, 3), f32) * 0.1,
        "conv2_b": jax.random.normal(ks[5], (cout,), f32) * 0.1,
        "bn2_g": 1.0 + 0.1 * jax.random.normal(ks[6], (cout,), f32),
        "bn2_b": 0.1 * jax.random.normal(ks[7], (cout,), f32),
        "bn2_m": jnp.zeros((cout,), f32), "bn2_v": jnp.ones((cout,), f32),
        "sc_w": jax.random.normal(ks[8], (cout, cin, 1, 1), f32) * 0.3,
        "sc_b": jax.random.normal(ks[9], (cout,), f32) * 0.1,
        "bns_g": jnp.ones((cout,), f32), "bns_b": jnp.zeros((cout,), f32),
        "bns_m": jnp.zeros((cout,), f32), "bns_v": jnp.ones((cout,), f32),
        "fc1_w": jax.random.normal(ks[10], (cout, cr), f32) * 0.2,
        "fc1_b": jnp.zeros((cr,), f32),
        "fc2_w": jax.random.normal(ks[11], (cr, cout), f32) * 0.2,
        "fc2_b": jnp.zeros((cout,), f32),
    }


if __name__ == "__main__":
    key = jax.random.PRNGKey(0)
    kx, kp = jax.random.split(key)

    N, CIN, H, W = 2, 4, 16, 16
    COUT, STRIDE, R = 32, 2, 16

    x = jax.random.normal(kx, (N, CIN, H, W), jnp.float32)   # NCHW, like PyTorch
    params = make_params(kp, CIN, COUT, R)

    out = jax.block_until_ready(basic_residual_se_block(x, params, STRIDE))
    ref = jax.block_until_ready(reference(x, params, STRIDE))

    assert out.shape == (N, COUT, H // STRIDE, W // STRIDE), out.shape
    assert jnp.allclose(out, ref, rtol=5e-2, atol=5e-2), \
        float(jnp.max(jnp.abs(out - ref)))

    print("KERNEL_OK")
</pallas_src>

<mosaic_0001>
module attributes {stable_mosaic.version = 11 : i64} {
  func.func @_conv_bn_kernel(%arg0: i32, %arg1: memref<128x36xbf16, #tpu.memory_space<vmem>>, %arg2: memref<36x32xbf16, #tpu.memory_space<vmem>>, %arg3: memref<1x32xf32, #tpu.memory_space<vmem>>, %arg4: memref<1x32xf32, #tpu.memory_space<vmem>>, %arg5: memref<128x32xbf16, #tpu.memory_space<vmem>>) attributes {dimension_semantics = [#tpu.dimension_semantics<parallel>], iteration_bounds = array<i64: 1>, scalar_prefetch = 0 : i64, scratch_operands = 0 : i64, tpu.core_type = #tpu.core_type<tc>, window_params = [{transform_indices = @transform_0, window_bounds = array<i64: 128, 36>}, {pipeline_mode = #tpu.pipeline_mode<synchronous>, transform_indices = @transform_1, window_bounds = array<i64: 36, 32>}, {pipeline_mode = #tpu.pipeline_mode<synchronous>, transform_indices = @transform_2, window_bounds = array<i64: 1, 32>}, {pipeline_mode = #tpu.pipeline_mode<synchronous>, transform_indices = @transform_3, window_bounds = array<i64: 1, 32>}, {transform_indices = @transform_4, window_bounds = array<i64: 128, 32>}]} {
    %c0 = arith.constant 0 : index
    %c0_0 = arith.constant 0 : index
    %0 = vector.load %arg1[%c0, %c0_0] : memref<128x36xbf16, #tpu.memory_space<vmem>>, vector<128x36xbf16>
    %c0_1 = arith.constant 0 : index
    %c0_2 = arith.constant 0 : index
    %1 = vector.load %arg2[%c0_1, %c0_2] : memref<36x32xbf16, #tpu.memory_space<vmem>>, vector<36x32xbf16>
    %cst = arith.constant dense<0.000000e+00> : vector<128x32xf32>
    %2 = tpu.matmul %0, %1, %cst {dimension_numbers = #tpu.dot_dimension_numbers<[1], [0], [0], [1], [0, 0, 1, 1], [], []>} : vector<128x36xbf16>, vector<36x32xbf16>, vector<128x32xf32> -> vector<128x32xf32>
    %c0_3 = arith.constant 0 : index
    %c0_4 = arith.constant 0 : index
    %3 = vector.load %arg3[%c0_3, %c0_4] : memref<1x32xf32, #tpu.memory_space<vmem>>, vector<1x32xf32>
    %4 = vector.broadcast %3 : vector<1x32xf32> to vector<128x32xf32>
    %5 = arith.mulf %2, %4 : vector<128x32xf32>
    %c0_5 = arith.constant 0 : index
    %c0_6 = arith.constant 0 : index
    %6 = vector.load %arg4[%c0_5, %c0_6] : memref<1x32xf32, #tpu.memory_space<vmem>>, vector<1x32xf32>
    %7 = vector.broadcast %6 : vector<1x32xf32> to vector<128x32xf32>
    %8 = arith.addf %5, %7 : vector<128x32xf32>
    %cst_7 = arith.constant 0.000000e+00 : f32
    %9 = vector.broadcast %cst_7 : f32 to vector<128x32xf32>
    %10 = arith.maximumf %8, %9 : vector<128x32xf32>
    %11 = arith.truncf %10 : vector<128x32xf32> to vector<128x32xbf16>
    %c0_8 = arith.constant 0 : index
    %c0_9 = arith.constant 0 : index
    %12 = vector.load %arg5[%c0_8, %c0_9] : memref<128x32xbf16, #tpu.memory_space<vmem>>, vector<128x32xbf16>
    tpu.vector_store %arg5[%c0_8, %c0_9], %11 {strides = array<i32>} : memref<128x32xbf16, #tpu.memory_space<vmem>>, vector<128x32xbf16>,
    return
  }
  func.func @transform_0(%arg0: i32) -> (i32, i32) {
    %c0_i32 = arith.constant 0 : i32
    %c0_i32_0 = arith.constant 0 : i32
    return %arg0, %c0_i32 : i32, i32
  }
  func.func @transform_1(%arg0: i32) -> (i32, i32) {
    %c0_i32 = arith.constant 0 : i32
    %c0_i32_0 = arith.constant 0 : i32
    %c0_i32_1 = arith.constant 0 : i32
    return %c0_i32, %c0_i32_0 : i32, i32
  }
  func.func @transform_2(%arg0: i32) -> (i32, i32) {
    %c0_i32 = arith.constant 0 : i32
    %c0_i32_0 = arith.constant 0 : i32
    %c0_i32_1 = arith.constant 0 : i32
    return %c0_i32, %c0_i32_0 : i32, i32
  }
  func.func @transform_3(%arg0: i32) -> (i32, i32) {
    %c0_i32 = arith.constant 0 : i32
    %c0_i32_0 = arith.constant 0 : i32
    %c0_i32_1 = arith.constant 0 : i32
    return %c0_i32, %c0_i32_0 : i32, i32
  }
  func.func @transform_4(%arg0: i32) -> (i32, i32) {
    %c0_i32 = arith.constant 0 : i32
    %c0_i32_0 = arith.constant 0 : i32
    return %arg0, %c0_i32 : i32, i32
  }
}

</mosaic_0001>

<bundles_post_ra>
// kernel: tpu_custom_call.1
= control target key start
LH: loop header
LB: loop body
LE: loop exit
PB: predicated region body
PF: predicated region fallthrough
CT: control target
= control target key end

     0   :  { %vm94_vm0 = vcmask 293888   ;;  %vm119_vm1 = vcmask 1041408   ;;  %vm346_vm2 = vcmask 257024   ;;  %s644_s1 = inlined_call_operand.vmem [shape: bf16[36,32], index: 1, kind: input, shape index: {}]   ;;  %s645_s0 = inlined_call_operand.vmem [shape: bf16[128,36], index: 0, kind: input, shape index: {}]   ;;  %s646_s2 = inlined_call_operand.vmem [shape: f32[1,32], index: 2, kind: input, shape index: {}]   ;;  %s647_s3 = inlined_call_operand.vmem [shape: f32[1,32], index: 3, kind: input, shape index: {}]   ;;  %s648_s4 = inlined_call_operand.vmem [shape: bf16[128,32], index: 4, kind: output, shape index: {}]  }
   0x1   :  { %v461_v0 = vld [vmem:[%s644_s1] sm:$0xff]   ;;  %v462_v1 = vld [vmem:[%s644_s1 + $0x8] sm:$0xff]   ;;  %v463_v2 = vld [vmem:[%s644_s1 + $0x10] ss:$0 sps:$4 sm:$0x33]  }
   0x2   :  { %431 = vmatprep.subr.bf16.mxu0 %v461_v0  ;;  %453 = vmatprep.subr.bf16.mxu1 %v461_v0  ;;  %v464_v3 = vld [vmem:[%s645_s0] sm:$0xff]   ;;  %v121_v5 = vsel %vm119_vm1, %v463_v2, 0  ;;  %v466_v6 = vld [vmem:[%s645_s0 + $0x8] sm:$0xff]   ;;  %v468_v8 = vld [vmem:[%s645_s0 + $0x10] sm:$0xff]  }
   0x3   :  { %432 = vmatpush3.bf16.msra.mxu0 %v461_v0  ;;  %456 = vmatpush3.bf16.msra.mxu1 %v461_v0  ;;  %v465_v4 = vld [vmem:[%s645_s0 + $0x20] sm:$0xff]   ;;  %v467_v7 = vld [vmem:[%s645_s0 + $0x28] sm:$0xff]   ;;  %v469_v9 = vld [vmem:[%s645_s0 + $0x30] sm:$0xff]  }
   0x4   :  { %433 = vmatprep.subr.bf16.mxu0 %v462_v1  ;;  %454 = vmatprep.subr.bf16.mxu1 %v462_v1  ;;  %v470_v10 = vld [vmem:[%s645_s0 + $0x18] sm:$0xff]   ;;  %v541_v12 = vld [vmem:[%s646_s2] ss:$0 sm:$0xff] }
   0x5   :  { %437 = vmatprep.mubr.msk.bf16.mxu0 %vm94_vm0, %v464_v3  ;;  %445 = vmatprep.mubr.msk.bf16.mxu1 %vm94_vm0, %v465_v4  ;;  %v471_v11 = vld [vmem:[%s645_s0 + $0x38] sm:$0xff]   ;;  %v546_v14 = vld [vmem:[%s647_s3] ss:$0 sm:$0xff] }
   0x7   :  { %434 = vmatpush3.bf16.msra.mxu0 %v462_v1  ;;  %457 = vmatpush3.bf16.msra.mxu1 %v462_v1 }
   0x8   :  { %459 = vmatprep.subr.msk.bf16.mxu0 %vm119_vm1, %v463_v2  ;;  %460 = vmatprep.subr.msk.bf16.mxu1 %vm119_vm1, %v463_v2 }
   0xb   :  { %436 = vmatpush3.bf16.msra.mxu0 %v121_v5  ;;  %458 = vmatpush3.bf16.msra.mxu1 %v121_v5 }
   0xe   :  { %438 = vmatmul.mubr.msk.bf16.vlgmr.msra.gmra.mrb[0].mxu0 %vm94_vm0, %v466_v6  ;;  %446 = vmatmul.mubr.msk.bf16.vlgmr.msra.gmra.mrb[0].mxu1 %vm94_vm0, %v467_v7 }
   0xf   :  { %441 = vmatprep.mubr.msk.bf16.mxu0 %vm94_vm0, %v468_v8  ;;  %449 = vmatprep.mubr.msk.bf16.mxu1 %vm94_vm0, %v469_v9 }
  0x16   :  { %442 = vmatmul.mubr.msk.bf16.gmra.mrb[4].mxu0 %vm94_vm0, %v470_v10  ;;  %450 = vmatmul.mubr.msk.bf16.gmra.mrb[4].mxu1 %vm94_vm0, %v471_v11 }
  0xe1   :  { %v439_v13 = vpop.f32.mrb[0].mxu0  ;;  %v447_v15 = vpop.f32.mrb[0].mxu1 }
  0xe2   :  { %v229_v16 = vmul.f32 %v439_v13, %v541_v12  ;;  %v237_v17 = vmul.f32 %v447_v15, %v541_v12  ;;  %v157_v18 = vpop.f32.mrb[1].mxu0  ;;  %v189_v19 = vpop.f32.mrb[1].mxu1 }
  0xe3   :  { %v227_v20 = vmul.f32 %v541_v12, %v157_v18  ;;  %v235_v21 = vmul.f32 %v541_v12, %v189_v19  ;;  %v440_v22 = vpop.f32.mrb[2].mxu0  ;;  %v448_v23 = vpop.f32.mrb[2].mxu1 }
  0xe4   :  { %v252_v24 = vadd.f32 %v546_v14, %v229_v16  ;;  %v260_v25 = vadd.f32 %v546_v14, %v237_v17  ;;  %v230_v26 = vmul.f32 %v440_v22, %v541_v12  ;;  %v238_v27 = vmul.f32 %v448_v23, %v541_v12  ;;  %v160_v28 = vpop.f32.mrb[3].mxu0  ;;  %v192_v29 = vpop.f32.mrb[3].mxu1 }
  0xe5   :  { %v250_v30 = vadd.f32 %v546_v14, %v227_v20  ;;  %v258_v31 = vadd.f32 %v546_v14, %v235_v21  ;;  %v228_v32 = vmul.f32 %v541_v12, %v160_v28  ;;  %v236_v33 = vmul.f32 %v541_v12, %v192_v29 }
  0xe6   :  { %v268_v34 = vmax.f32 %v252_v24, 0.0  ;;  %v276_v35 = vmax.f32 %v260_v25, 0.0  ;;  %v253_v36 = vadd.f32 %v546_v14, %v230_v26  ;;  %v261_v37 = vadd.f32 %v546_v14, %v238_v27 }
  0xe7   :  { %v266_v38 = vmax.f32 %v250_v30, 0.0  ;;  %v274_v39 = vmax.f32 %v258_v31, 0.0  ;;  %v251_v40 = vadd.f32 %v546_v14, %v228_v32  ;;  %v259_v41 = vadd.f32 %v546_v14, %v236_v33 }
  0xe8   :  { %v406_v42 = vpack.c.bf16 %v268_v34, %v268_v34  ;;  %v414_v43 = vpack.c.bf16 %v276_v35, %v276_v35  ;;  %v269_v44 = vmax.f32 %v253_v36, 0.0  ;;  %v277_v45 = vmax.f32 %v261_v37, 0.0 }
  0xe9   :  { %v404_v46 = vpack.c.bf16 %v266_v38, %v266_v38  ;;  %v412_v47 = vpack.c.bf16 %v274_v39, %v274_v39  ;;  %v267_v48 = vmax.f32 %v251_v40, 0.0  ;;  %v275_v49 = vmax.f32 %v259_v41, 0.0  ;;  %v443_v50 = vpop.f32.mrb[4].mxu0  ;;  %v451_v51 = vpop.f32.mrb[4].mxu1 }
  0xea   :  { %349 = vst.msk [vmem:[%s648_s4 + $0x8] sm:$0xf] %vm346_vm2, %v406_v42  ;;  %357 = vst.msk [vmem:[%s648_s4 + $0x28] sm:$0xf] %vm346_vm2, %v414_v43  ;;  %v407_v52 = vpack.c.bf16 %v269_v44, %v269_v44  ;;  %v415_v53 = vpack.c.bf16 %v277_v45, %v277_v45  ;;  %v233_v54 = vmul.f32 %v443_v50, %v541_v12  ;;  %v173_v56 = vpop.f32.mrb[5].mxu0  ;;  %v205_v57 = vpop.f32.mrb[5].mxu1 }
  0xeb   :  { %v241_v55 = vmul.f32 %v451_v51, %v541_v12  ;;  %347 = vst.msk [vmem:[%s648_s4] sm:$0xf] %vm346_vm2, %v404_v46  ;;  %355 = vst.msk [vmem:[%s648_s4 + $0x20] sm:$0xf] %vm346_vm2, %v412_v47  ;;  %v405_v58 = vpack.c.bf16 %v267_v48, %v267_v48  ;;  %v413_v59 = vpack.c.bf16 %v275_v49, %v275_v49  ;;  %v444_v62 = vpop.f32.mrb[6].mxu0  ;;  %v452_v63 = vpop.f32.mrb[6].mxu1 }
  0xec   :  { %v231_v60 = vmul.f32 %v541_v12, %v173_v56  ;;  %v239_v61 = vmul.f32 %v541_v12, %v205_v57  ;;  %350 = vst.msk [vmem:[%s648_s4 + $0xc] sm:$0xf] %vm346_vm2, %v407_v52  ;;  %358 = vst.msk [vmem:[%s648_s4 + $0x2c] sm:$0xf] %vm346_vm2, %v415_v53  ;;  %v256_v0 = vadd.f32 %v546_v14, %v233_v54  ;;  %v176_v4 = vpop.f32.mrb[7].mxu0  ;;  %v208_v5 = vpop.f32.mrb[7].mxu1 }
  0xed   :  { %v264_v1 = vadd.f32 %v546_v14, %v241_v55  ;;  %v234_v2 = vmul.f32 %v444_v62, %v541_v12  ;;  %v242_v3 = vmul.f32 %v452_v63, %v541_v12  ;;  %348 = vst.msk [vmem:[%s648_s4 + $0x4] sm:$0xf] %vm346_vm2, %v405_v58  ;;  %356 = vst.msk [vmem:[%s648_s4 + $0x24] sm:$0xf] %vm346_vm2, %v413_v59 }
  0xee   :  { %v254_v6 = vadd.f32 %v546_v14, %v231_v60  ;;  %v262_v7 = vadd.f32 %v546_v14, %v239_v61  ;;  %v232_v8 = vmul.f32 %v541_v12, %v176_v4  ;;  %v240_v9 = vmul.f32 %v541_v12, %v208_v5 }
  0xef   :  { %v272_v10 = vmax.f32 %v256_v0, 0.0  ;;  %v280_v11 = vmax.f32 %v264_v1, 0.0  ;;  %v257_v13 = vadd.f32 %v546_v14, %v234_v2  ;;  %v265_v15 = vadd.f32 %v546_v14, %v242_v3 }
  0xf0   :  { %v270_v16 = vmax.f32 %v254_v6, 0.0  ;;  %v278_v17 = vmax.f32 %v262_v7, 0.0  ;;  %v255_v18 = vadd.f32 %v546_v14, %v232_v8  ;;  %v263_v19 = vadd.f32 %v546_v14, %v240_v9 }
  0xf1   :  { %v410_v20 = vpack.c.bf16 %v272_v10, %v272_v10  ;;  %v418_v21 = vpack.c.bf16 %v280_v11, %v280_v11  ;;  %v273_v22 = vmax.f32 %v257_v13, 0.0  ;;  %v281_v23 = vmax.f32 %v265_v15, 0.0 }
  0xf2   :  { %v408_v24 = vpack.c.bf16 %v270_v16, %v270_v16  ;;  %v416_v25 = vpack.c.bf16 %v278_v17, %v278_v17  ;;  %v271_v26 = vmax.f32 %v255_v18, 0.0  ;;  %v279_v12 = vmax.f32 %v263_v19, 0.0 }
  0xf3   :  { %353 = vst.msk [vmem:[%s648_s4 + $0x18] sm:$0xf] %vm346_vm2, %v410_v20  ;;  %361 = vst.msk [vmem:[%s648_s4 + $0x38] sm:$0xf] %vm346_vm2, %v418_v21  ;;  %v411_v27 = vpack.c.bf16 %v273_v22, %v273_v22  ;;  %v419_v14 = vpack.c.bf16 %v281_v23, %v281_v23 }
  0xf4   :  { %351 = vst.msk [vmem:[%s648_s4 + $0x10] sm:$0xf] %vm346_vm2, %v408_v24  ;;  %359 = vst.msk [vmem:[%s648_s4 + $0x30] sm:$0xf] %vm346_vm2, %v416_v25  ;;  %v409_v28 = vpack.c.bf16 %v271_v26, %v271_v26  ;;  %v417_v29 = vpack.c.bf16 %v279_v12, %v279_v12 }
  0xf5   :  { %354 = vst.msk [vmem:[%s648_s4 + $0x1c] sm:$0xf] %vm346_vm2, %v411_v27  ;;  %362 = vst.msk [vmem:[%s648_s4 + $0x3c] sm:$0xf] %vm346_vm2, %v419_v14 }
  0xf6   :  { %352 = vst.msk [vmem:[%s648_s4 + $0x14] sm:$0xf] %vm346_vm2, %v409_v28  ;;  %360 = vst.msk [vmem:[%s648_s4 + $0x34] sm:$0xf] %vm346_vm2, %v417_v29 }

</bundles_post_ra>
